<compile_context>
chip_gen: v7x
topology: tpu7x:2x2x1
jax: 0.10.0
libtpu: 0.0.40
codegen_flags: <defaults>
</compile_context>

<pallas_src>
import functools

import jax
import jax.numpy as jnp
from jax import lax
from jax.experimental import pallas as pl
from jax.experimental.pallas import tpu as pltpu


def _gamma_pow(v, gamma):
    """(v ** gamma) with integer gamma as a VPU multiply chain instead of EUP pow."""
    if float(gamma) == int(gamma) and gamma >= 0:
        out = jnp.ones_like(v)
        for _ in range(int(gamma)):
            out = out * v
        return out
    return v ** gamma


# ------------------------------------------------------------------------------------
# Kernel A: row-major layout (TILE_N, C) -- used when C is large enough to fill lanes.
# ------------------------------------------------------------------------------------
def _focal_loss_kernel_rowmajor(x_ref, t_ref, at_ref, o_ref, *, gamma, n_rows, tile_n):
    i = pl.program_id(0)

    x = x_ref[...].astype(jnp.float32)          # (TILE_N, C) logits, cast in-VMEM
    t = t_ref[...]                               # (TILE_N, 1) int32 targets
    alpha_t = at_ref[...]                        # (TILE_N, 1) f32 alpha[target] (wrapper gather)

    tn, c = x.shape

    # Validity mask for the (possibly ragged) last block. No full-tile scrub needed: all
    # reductions below are per-row, and jnp.where selects (padding garbage never propagates).
    row = i * tile_n + lax.broadcasted_iota(jnp.int32, (tn, 1), 0)
    valid = row < n_rows                         # (TILE_N, 1) bool

    # Numerically stable logsumexp along classes (lane axis).
    m = jnp.max(x, axis=-1, keepdims=True)                                 # (TILE_N, 1)
    lse = m + jnp.log(jnp.sum(jnp.exp(x - m), axis=-1, keepdims=True))     # (TILE_N, 1)

    # Target gather: one select + one lane reduction. alpha scaling happens on the column.
    col = lax.broadcasted_iota(jnp.int32, (tn, c), 1)
    x_t = jnp.sum(jnp.where(col == t, x, 0.0), axis=-1, keepdims=True)     # (TILE_N, 1)
    ce = alpha_t * (lse - x_t)

    # 1 - exp(-ce) kept verbatim for exact parity with the PyTorch/JAX reference.
    pt = jnp.exp(-ce)
    factor = _gamma_pow(1.0 - pt, gamma)
    focal = jnp.where(valid, factor * ce, 0.0)

    # Per-block partial sum, replicated over a lane-aligned (1, 8, 128) output tile
    # (unmasked stores; wrapper reads [:, 0, 0]).
    o_ref[...] = jnp.full(o_ref.shape, jnp.sum(focal), dtype=jnp.float32)


# ------------------------------------------------------------------------------------
# Kernel B: lane-major layout (C, TILE_N) -- small C packed along sublanes, N along lanes.
# ------------------------------------------------------------------------------------
def _focal_loss_kernel_lanemajor(x_ref, t_ref, at_ref, o_ref, *, gamma, n_rows, tile_n):
    i = pl.program_id(0)

    x = x_ref[...].astype(jnp.float32)          # (C, TILE_N)
    t = t_ref[...]                               # (1, TILE_N) int32 targets
    alpha_t = at_ref[...]                        # (1, TILE_N) f32 alpha[target]

    c, tn = x.shape

    col = i * tile_n + lax.broadcasted_iota(jnp.int32, (1, tn), 1)
    valid = col < n_rows                         # (1, TILE_N) bool

    # logsumexp across classes = across <= 8 sublanes (XLU), per-sample along lanes.
    m = jnp.max(x, axis=0, keepdims=True)                                  # (1, TILE_N)
    lse = m + jnp.log(jnp.sum(jnp.exp(x - m), axis=0, keepdims=True))      # (1, TILE_N)

    cls = lax.broadcasted_iota(jnp.int32, (c, tn), 0)
    x_t = jnp.sum(jnp.where(cls == t, x, 0.0), axis=0, keepdims=True)      # (1, TILE_N)
    ce = alpha_t * (lse - x_t)

    pt = jnp.exp(-ce)
    factor = _gamma_pow(1.0 - pt, gamma)
    focal = jnp.where(valid, factor * ce, 0.0)

    o_ref[...] = jnp.full(o_ref.shape, jnp.sum(focal), dtype=jnp.float32)


# ------------------------------------------------------------------------------------
# Tiling heuristics (generation-aware).
# ------------------------------------------------------------------------------------
def _round_up(x, m):
    return ((x + m - 1) // m) * m


def _vmem_capacity_bytes():
    """Physical VMEM per TensorCore; conservative (v7x) fallback if the query fails."""
    try:
        info = pltpu.get_tpu_info()
        for name in ("vmem_capacity_bytes", "vmem_size_bytes", "vmem_bytes"):
            v = getattr(info, name, None)
            if v:
                return int(v)
    except Exception:
        pass
    return 64 * 1024 * 1024


def _choose_tile_row(n, c, itemsize, vmem_limit):
    """Samples on the sublane axis; full C on the lane axis."""
    budget = vmem_limit // 2  # headroom for pipelining + in-kernel temporaries
    # Per row: 2x double-buffered native-dtype logits row + 2x double-buffered (row,1) columns
    # (targets + alpha_t; each inflates to 128 lanes -> 512 B/row/buffer) + ~6 f32 full-tile temps.
    per_row = 2 * c * itemsize + 4 * 512 + 6 * c * 4
    t = budget // max(1, per_row)
    t = max(8, min((t // 8) * 8, 4096))
    t = min(t, _round_up(n, 8))
    if t >= n and n > 8:  # guarantee >= 2 blocks so both v7x TensorCores get work
        t = max(8, _round_up((n + 1) // 2, 8))
    return t


def _choose_tile_lane(n, c, itemsize, vmem_limit):
    """Samples on the 128-lane axis (small C packed along sublanes)."""
    if n < 128:
        return n  # single block; lane dim equals the full array dim
    budget = vmem_limit // 2
    # Per sample: 2x double-buffered native-dtype class column + 2x double-buffered (1,row)
    # columns (pad to 8 sublanes -> 32 B/sample/buffer) + ~6 f32 full-tile temporaries.
    per_col = 2 * c * itemsize + 4 * 8 * 4 + 6 * c * 4
    t = budget // max(1, per_col)
    t = max(128, min((t // 128) * 128, 64 * 1024))
    t = min(t, _round_up(n, 128))
    if t >= n and n > 128:  # >= 2 blocks for megacore sharding on v7x
        t = max(128, _round_up((n + 1) // 2, 128))
    return t


# ------------------------------------------------------------------------------------
# Wrapper.
# ------------------------------------------------------------------------------------
def weighted_focal_loss(inputs, targets, alpha, gamma=2.0, reduction="mean", tile_n=None):
    """inputs: (N, C) logits (any float dtype); targets: (N,) int; alpha: (C,) float weights."""
    n, c = inputs.shape
    itemsize = jnp.dtype(inputs.dtype).itemsize

    vmem_cap = _vmem_capacity_bytes()
    vmem_limit = min(int(vmem_cap * 3 // 4), 96 * 1024 * 1024)  # 48 MiB on v7x, 96 MiB on v5e/v6e

    targets_i32 = targets.astype(jnp.int32)
    # Hoisted class-weight gather (N-element XLA gather) -> removes two full-tile VPU passes.
    alpha_t = alpha.astype(jnp.float32)[targets_i32]

    lane_major = c <= 16  # tiny class counts: pack samples onto the 128-lane axis

    if lane_major:
        if tile_n is None:
            tile_n = _choose_tile_lane(n, c, itemsize, vmem_limit)
        num_blocks = pl.cdiv(n, tile_n)
        kernel = functools.partial(
            _focal_loss_kernel_lanemajor, gamma=gamma, n_rows=n, tile_n=tile_n)
        in_specs = [
            pl.BlockSpec((c, tile_n), lambda i: (0, i)),     # logits.T tile (native dtype)
            pl.BlockSpec((1, tile_n), lambda i: (0, i)),     # targets tile
            pl.BlockSpec((1, tile_n), lambda i: (0, i)),     # alpha[target] tile
        ]
        args = (inputs.T, targets_i32.reshape(1, n), alpha_t.reshape(1, n))
    else:
        if tile_n is None:
            tile_n = _choose_tile_row(n, c, itemsize, vmem_limit)
        num_blocks = pl.cdiv(n, tile_n)
        kernel = functools.partial(
            _focal_loss_kernel_rowmajor, gamma=gamma, n_rows=n, tile_n=tile_n)
        in_specs = [
            pl.BlockSpec((tile_n, c), lambda i: (i, 0)),     # logits tile (native dtype)
            pl.BlockSpec((tile_n, 1), lambda i: (i, 0)),     # targets tile
            pl.BlockSpec((tile_n, 1), lambda i: (i, 0)),     # alpha[target] tile
        ]
        args = (inputs, targets_i32.reshape(n, 1), alpha_t.reshape(n, 1))

    # TODO(synk): for vocab-scale C that can't fit a single logits block in VMEM, add a second
    # "arbitrary" grid axis over C with an online (streaming) logsumexp + masked gather.
    grid_spec = pltpu.PrefetchScalarGridSpec(
        num_scalar_prefetch=0,
        grid=(num_blocks,),
        in_specs=in_specs,
        out_specs=pl.BlockSpec((1, 8, 128), lambda i: (i, 0, 0)),
    )

    cost = pl.CostEstimate(
        flops=8 * n * c,
        transcendentals=n * c + 2 * n,
        bytes_accessed=n * c * itemsize + 2 * n * 4 + num_blocks * 8 * 128 * 4,
    )

    partials = pl.pallas_call(
        kernel,
        out_shape=jax.ShapeDtypeStruct((num_blocks, 8, 128), jnp.float32),
        grid_spec=grid_spec,
        compiler_params=pltpu.CompilerParams(
            dimension_semantics=("parallel",),   # independent blocks -> both TCs on v7x
            vmem_limit_bytes=vmem_limit,
        ),
        cost_estimate=cost,
    )(*args)

    total = jnp.sum(partials[:, 0, 0])
    if reduction == "mean":
        # torch.mean over samples (divide by N; see note at top of file).
        return total / jnp.float32(n)
    elif reduction == "sum":
        return total
    # TODO(synk): reduction='none' (per-sample output) needs a per-row output spec; not fused here.
    raise NotImplementedError("reduction='none' is not implemented in the Pallas kernel")


def _reference(inputs, targets, alpha, gamma=2.0):
    logp = jax.nn.log_softmax(inputs.astype(jnp.float32), axis=-1)
    nll = -jnp.take_along_axis(logp, targets[:, None], axis=-1)[:, 0]
    ce = alpha[targets] * nll
    pt = jnp.exp(-ce)
    return jnp.mean((1.0 - pt) ** gamma * ce)


if __name__ == "__main__":
    key = jax.random.PRNGKey(0)
    k1, k2, k3, k4 = jax.random.split(key, 4)

    # Demo-sized problem from the module: small batch, 5 classes (small-C lane-major path).
    N, C = 8, 5
    inputs = jax.random.normal(k1, (N, C), dtype=jnp.float32)
    targets = jax.random.randint(k2, (N,), 0, C, dtype=jnp.int32)
    alpha = jnp.array([1.0, 2.0, 0.5, 1.5, 1.0], dtype=jnp.float32)

    loss = jax.block_until_ready(weighted_focal_loss(inputs, targets, alpha, gamma=2.0))
    ref = _reference(inputs, targets, alpha, gamma=2.0)
    assert jnp.allclose(loss, ref, rtol=1e-5, atol=1e-6), (loss, ref)

    # Multi-block lane-major path with a ragged last block (N not a multiple of the tile).
    N2 = 300
    inputs2 = jax.random.normal(k3, (N2, C), dtype=jnp.float32)
    targets2 = jax.random.randint(k2, (N2,), 0, C, dtype=jnp.int32)
    loss2 = jax.block_until_ready(weighted_focal_loss(inputs2, targets2, alpha, gamma=2.0))
    ref2 = _reference(inputs2, targets2, alpha, gamma=2.0)
    assert jnp.allclose(loss2, ref2, rtol=1e-5, atol=1e-6), (loss2, ref2)

    # Row-major path (larger C), bf16 logits, ragged N, >=2 blocks via the tiling heuristic.
    N3, C3 = 20, 37
    inputs3 = jax.random.normal(k4, (N3, C3), dtype=jnp.bfloat16)
    targets3 = jax.random.randint(k2, (N3,), 0, C3, dtype=jnp.int32)
    alpha3 = jax.random.uniform(k1, (C3,), minval=0.5, maxval=2.0, dtype=jnp.float32)
    loss3 = jax.block_until_ready(weighted_focal_loss(inputs3, targets3, alpha3, gamma=2.0))
    ref3 = _reference(inputs3, targets3, alpha3, gamma=2.0)
    assert jnp.allclose(loss3, ref3, rtol=1e-3, atol=1e-4), (loss3, ref3)

    print("KERNEL_OK")
</pallas_src>

<mosaic_0001>
module attributes {stable_mosaic.version = 11 : i64} {
  func.func @_focal_loss_kernel_lanemajor(%arg0: i32, %arg1: memref<5x8xf32, #tpu.memory_space<vmem>>, %arg2: memref<1x8xi32, #tpu.memory_space<vmem>>, %arg3: memref<1x8xf32, #tpu.memory_space<vmem>>, %arg4: memref<1x8x128xf32, #tpu.memory_space<vmem>>) attributes {dimension_semantics = [#tpu.dimension_semantics<parallel>], iteration_bounds = array<i64: 1>, scalar_prefetch = 0 : i64, scratch_operands = 0 : i64, tpu.core_type = #tpu.core_type<tc>, window_params = [{transform_indices = @transform_0, window_bounds = array<i64: 5, 8>}, {transform_indices = @transform_1, window_bounds = array<i64: 1, 8>}, {transform_indices = @transform_2, window_bounds = array<i64: 1, 8>}, {transform_indices = @transform_3, window_bounds = array<i64: 1, 8, 128>}]} {
    %c0 = arith.constant 0 : index
    %c0_0 = arith.constant 0 : index
    %0 = vector.load %arg1[%c0, %c0_0] : memref<5x8xf32, #tpu.memory_space<vmem>>, vector<5x8xf32>
    %c0_1 = arith.constant 0 : index
    %c0_2 = arith.constant 0 : index
    %1 = vector.load %arg2[%c0_1, %c0_2] : memref<1x8xi32, #tpu.memory_space<vmem>>, vector<1x8xi32>
    %c0_3 = arith.constant 0 : index
    %c0_4 = arith.constant 0 : index
    %2 = vector.load %arg3[%c0_3, %c0_4] : memref<1x8xf32, #tpu.memory_space<vmem>>, vector<1x8xf32>
    %c8_i32 = arith.constant 8 : i32
    %3 = arith.muli %arg0, %c8_i32 : i32
    %4 = tpu.iota {dimensions = array<i32: 1>} : vector<1x8xi32>
    %5 = vector.broadcast %3 : i32 to vector<1x8xi32>
    %6 = arith.addi %5, %4 : vector<1x8xi32>
    %c8_i32_5 = arith.constant 8 : i32
    %7 = vector.broadcast %c8_i32_5 : i32 to vector<1x8xi32>
    %8 = arith.cmpi slt, %6, %7 : vector<1x8xi32>
    %cst = arith.constant dense<0xFF800000> : vector<8xf32>
    %9 = vector.multi_reduction <maximumf>, %0, %cst [0] : vector<5x8xf32> to vector<8xf32>
    %10 = vector.shape_cast %9 : vector<8xf32> to vector<1x8xf32>
    %11 = vector.broadcast %10 : vector<1x8xf32> to vector<5x8xf32>
    %12 = arith.subf %0, %11 : vector<5x8xf32>
    %13 = math.exp %12 : vector<5x8xf32>
    %cst_6 = arith.constant dense<0.000000e+00> : vector<8xf32>
    %14 = vector.multi_reduction <add>, %13, %cst_6 [0] : vector<5x8xf32> to vector<8xf32>
    %15 = vector.shape_cast %14 : vector<8xf32> to vector<1x8xf32>
    %16 = math.log %15 : vector<1x8xf32>
    %17 = arith.addf %10, %16 : vector<1x8xf32>
    %18 = tpu.iota {dimensions = array<i32: 0>} : vector<5x8xi32>
    %19 = vector.broadcast %1 : vector<1x8xi32> to vector<5x8xi32>
    %20 = arith.cmpi eq, %18, %19 : vector<5x8xi32>
    %cst_7 = arith.constant 0.000000e+00 : f32
    %21 = vector.broadcast %cst_7 : f32 to vector<5x8xf32>
    %22 = arith.select %20, %0, %21 : vector<5x8xi1>, vector<5x8xf32>
    %cst_8 = arith.constant dense<0.000000e+00> : vector<8xf32>
    %23 = vector.multi_reduction <add>, %22, %cst_8 [0] : vector<5x8xf32> to vector<8xf32>
    %24 = vector.shape_cast %23 : vector<8xf32> to vector<1x8xf32>
    %25 = arith.subf %17, %24 : vector<1x8xf32>
    %26 = arith.mulf %2, %25 : vector<1x8xf32>
    %cst_9 = arith.constant 0.000000e+00 : f32
    %27 = vector.broadcast %cst_9 : f32 to vector<1x8xf32>
    %28 = arith.subf %27, %26 : vector<1x8xf32>
    %29 = math.exp %28 : vector<1x8xf32>
    %cst_10 = arith.constant 1.000000e+00 : f32
    %30 = vector.broadcast %cst_10 : f32 to vector<1x8xf32>
    %31 = arith.subf %30, %29 : vector<1x8xf32>
    %cst_11 = arith.constant 1.000000e+00 : f32
    %32 = vector.broadcast %cst_11 : f32 to vector<1x8xf32>
    %33 = arith.mulf %32, %31 : vector<1x8xf32>
    %34 = arith.mulf %33, %31 : vector<1x8xf32>
    %35 = arith.mulf %34, %26 : vector<1x8xf32>
    %cst_12 = arith.constant 0.000000e+00 : f32
    %36 = vector.broadcast %cst_12 : f32 to vector<1x8xf32>
    %37 = arith.select %8, %35, %36 : vector<1x8xi1>, vector<1x8xf32>
    %38 = vector.shape_cast %37 : vector<1x8xf32> to vector<1x1x8xf32>
    %cst_13 = arith.constant dense<0.000000e+00> : vector<1xf32>
    %39 = vector.multi_reduction <add>, %38, %cst_13 [1, 2] : vector<1x1x8xf32> to vector<1xf32>
    %40 = vector.shape_cast %39 : vector<1xf32> to vector<1x1x1xf32>
    %41 = vector.extract %40[0, 0, 0] : f32 from vector<1x1x1xf32>
    %42 = vector.broadcast %41 : f32 to vector<1x8x128xf32>
    %c0_14 = arith.constant 0 : index
    %c0_15 = arith.constant 0 : index
    %c0_16 = arith.constant 0 : index
    %43 = vector.load %arg4[%c0_14, %c0_15, %c0_16] : memref<1x8x128xf32, #tpu.memory_space<vmem>>, vector<1x8x128xf32>
    tpu.vector_store %arg4[%c0_14, %c0_15, %c0_16], %42 {strides = array<i32>} : memref<1x8x128xf32, #tpu.memory_space<vmem>>, vector<1x8x128xf32>,
    return
  }
  func.func @transform_0(%arg0: i32) -> (i32, i32) {
    %c0_i32 = arith.constant 0 : i32
    %c0_i32_0 = arith.constant 0 : i32
    return %c0_i32, %arg0 : i32, i32
  }
  func.func @transform_1(%arg0: i32) -> (i32, i32) {
    %c0_i32 = arith.constant 0 : i32
    %c0_i32_0 = arith.constant 0 : i32
    return %c0_i32, %arg0 : i32, i32
  }
  func.func @transform_2(%arg0: i32) -> (i32, i32) {
    %c0_i32 = arith.constant 0 : i32
    %c0_i32_0 = arith.constant 0 : i32
    return %c0_i32, %arg0 : i32, i32
  }
  func.func @transform_3(%arg0: i32) -> (i32, i32, i32) {
    %c0_i32 = arith.constant 0 : i32
    %c0_i32_0 = arith.constant 0 : i32
    %c0_i32_1 = arith.constant 0 : i32
    return %arg0, %c0_i32, %c0_i32_0 : i32, i32, i32
  }
}

</mosaic_0001>

<bundles_post_ra>
// kernel: tpu_custom_call.1
= control target key start
LH: loop header
LB: loop body
LE: loop exit
PB: predicated region body
PF: predicated region fallthrough
CT: control target
= control target key end

     0   :  { %8 = vsyncpa [#allocation3], 0  ;;  %s223_s0 = inlined_call_operand.hbm [shape: f32[5,8], index: 0, kind: input, shape index: {}]   ;;  %s224_s1 = inlined_call_operand.vmem [shape: s32[1,8], index: 1, kind: input, shape index: {}]   ;;  %s225_s2 = inlined_call_operand.vmem [shape: f32[1,8], index: 2, kind: input, shape index: {}]   ;;  %s226_s3 = inlined_call_operand.hbm [shape: f32[1,8,128], index: 3, kind: output, shape index: {}]  }
   0x1   :  { %9 = vsyncpa [#allocation4], 0  ;;  %s168_s12 = smov [#allocation2]   ;;  %s120_s16 = scalar_lea.hbm %s223_s0, 128 }
   0x2   :  { %s16_s13 = sshll.u32 %s168_s12, 4  ;;  %p121_p0 = scmp.ne.s32.totalorder %s223_s0, %s120_s16  ;;  %s17_s13 = int_to_ptr.vmem [resolvable:$true] %s16_s13 }
   0x3   :  { %p124_p1 = scmp.lt.u32.totalorder %s120_s16, %s223_s0 }
   0x5   :  { %p126_p2 = pnand %p124_p1, %p121_p0 }
   0x7   :  { %129 = shalt.err (!%p126_p2)
}
   0x8   :  { %s130_s21 = scalar_lea.vmem %s17_s13, 128  ;;  %p135_p4 = scmp.lt.s32.totalorder %s17_s13, %s17_s13 }
   0x9   :  { %p131_p3 = scmp.ne.s32.totalorder %s17_s13, %s130_s21  ;;  %p136_p5 = scmp.lt.s32.totalorder %s130_s21, %s130_s21 }
   0xb   :  { %p137_p6 = por %p136_p5, %p135_p4 }
   0xd   :  { %p138_p7 = pnand %p137_p6, %p131_p3 }
   0xf   :  { %141 = shalt.err (!%p138_p7)
}
  0x10   :  { %19 = dma.hbm_to_vmem [thread:$0]  %s223_s0, 128, %s17_s13, [#allocation3]  }
  0x11   :  { %164 = dma.done.wait [#allocation3], 128  }
  0x12   :  { %165 = vsyncadd [#allocation3], 4294967168  ;;  %vm36_vm0 = vcmask 61440   ;;  %v27_v0 = vld [vmem:[#allocation2] sm:$0x1f]  ;;  %v31_v9 = vlaneseq  ;;  %vm81_vm3 = vcmask 57344  }
  0x13   :  { %v37_v1 = vsel %vm36_vm0, %v27_v0, -inf  ;;  %v109_v12 = vld [vmem:[%s224_s1] ss:$0 sm:$0xff] }
  0x14   :  { %v38_v2 = vrot.slane %v37_v1, 4  ;;  %v58_v11 = vshrl.u32 %v31_v9, 7  ;;  %v29_v32 = vld [vmem:[%s225_s2] sm:$0x1]  ;;  %v32_v38 = vand.u32 127, %v31_v9  ;;  %s169_s2 = smov [#allocation5]  }
  0x15   :  { %s100_s26 = sshll.u32 %s169_s2, 4  ;;  %s101_s26 = int_to_ptr.vmem [resolvable:$true] %s100_s26 }
  0x16   :  { %v39_v3 = vmax.f32 %v37_v1, %v38_v2  ;;  %vm63_vm1 = vcmp.eq.s32.totalorder %v58_v11, %v109_v12  ;;  %vm35_vm2 = vcmp.lt.s32.totalorder %v32_v38, 8  ;;  %s142_s28 = scalar_lea.vmem %s101_s26, 128  ;;  %p147_p9 = scmp.lt.s32.totalorder %s101_s26, %s101_s26 }
  0x17   :  { %v64_v13 = vsel %vm63_vm1, %v27_v0, 0.0  ;;  %p143_p8 = scmp.ne.s32.totalorder %s101_s26, %s142_s28  ;;  %p148_p10 = scmp.lt.s32.totalorder %s142_s28, %s142_s28 }
  0x18   :  { %v40_v4 = vrot.slane %v39_v3, 2  ;;  %v65_v17 = vsel %vm36_vm0, %v64_v13, 0.0 }
  0x19   :  { %v66_v19 = vrot.slane %v65_v17, 4  ;;  %p149_p11 = por %p148_p10, %p147_p9 }
  0x1a   :  { %v41_v5 = vmax.f32 %v39_v3, %v40_v4 }
  0x1b   :  { %v67_v22 = vadd.f32 %v66_v19, %v65_v17  ;;  %p150_p12 = pnand %p149_p11, %p143_p8 }
  0x1c   :  { %v42_v6 = vrot.slane %v41_v5, 1 }
  0x1d   :  { %v68_v25 = vrot.slane %v67_v22, 2 }
  0x1e   :  { %v43_v7 = vmax.f32 %v41_v5, %v42_v6 }
  0x1f   :  { %v69_v26 = vadd.f32 %v68_v25, %v67_v22 }
  0x20   :  { %v44_v8 = vsub.f32 %v27_v0, %v43_v7 }
  0x21   :  { %v70_v27 = vrot.slane %v69_v26, 1 }
  0x22   :  { %v45_v10 = vmul.f32 1.442695, %v44_v8 }
  0x23   :  { %v71_v30 = vadd.f32 %v70_v27, %v69_v26 }
  0x24   :  { %114 = vpow2.f32 %v45_v10 }
  0x2e   :  { %v115_v14 = vpop.eup %114 }
  0x2f   :  { %v47_v15 = vsel %vm36_vm0, %v115_v14, 0.0 }
  0x30   :  { %v48_v16 = vrot.slane %v47_v15, 4 }
  0x32   :  { %v49_v18 = vadd.f32 %v48_v16, %v47_v15 }
  0x34   :  { %v50_v20 = vrot.slane %v49_v18, 2 }
  0x36   :  { %v51_v21 = vadd.f32 %v50_v20, %v49_v18 }
  0x38   :  { %v52_v23 = vrot.slane %v51_v21, 1 }
  0x3a   :  { %v53_v24 = vadd.f32 %v52_v23, %v51_v21 }
  0x3c   :  { %116 = vlog2.f32 %v53_v24 }
  0x46   :  { %v117_v28 = vpop.eup %116 }
  0x47   :  { %v55_v29 = vmul.f32 0.6931472, %v117_v28 }
  0x49   :  { %v56_v31 = vadd.f32 %v55_v29, %v43_v7 }
  0x4b   :  { %v72_v33 = vsub.f32 %v56_v31, %v71_v30 }
  0x4d   :  { %v73_v34 = vmul.f32 %v72_v33, %v29_v32 }
  0x4f   :  { %v74_v35 = vsub.f32 0.0, %v73_v34 }
  0x51   :  { %v75_v36 = vmul.f32 1.442695, %v74_v35 }
  0x53   :  { %118 = vpow2.f32 %v75_v36 }
  0x5d   :  { %v119_v37 = vpop.eup %118 }
  0x5e   :  { %v77_v39 = vsub.f32 1.0, %v119_v37 }
  0x60   :  { %v78_v40 = vmul.f32 %v77_v39, %v77_v39 }
  0x62   :  { %v79_v41 = vmul.f32 %v78_v40, %v73_v34 }
  0x64   :  { %v80_v42 = vsel %vm35_vm2, %v79_v41, 0.0 }
  0x65   :  { %v82_v43 = vsel %vm81_vm3, %v80_v42, 0.0 }
  0x66   :  { %83 = vadd.xlane.f32.xlu0 %v82_v43 }
  0xf3   :  { %v84_v44 = vpop.xlane.xlu0 %83 }
  0xf4   :  { %v85_v45 = vrot.slane %v84_v44, 4 }
  0xf6   :  { %v86_v46 = vadd.f32 %v85_v45, %v84_v44 }
  0xf8   :  { %v87_v47 = vrot.slane %v86_v46, 2 }
  0xfa   :  { %v88_v48 = vadd.f32 %v87_v47, %v86_v46 }
  0xfc   :  { %v89_v49 = vrot.slane %v88_v48, 1 }
  0xfe   :  { %v90_v50 = vadd.f32 %v89_v49, %v88_v48 }
 0x100   :  { %110 = vpush %v90_v50 }
 0x131   :  { %s111_s27 = spop %110 }
 0x132   :  { %v92_v51 = vstv %s111_s27 }
 0x133   :  { %93 = vst [vmem:[#allocation5] sm:$0xff] %v92_v51 }
 0x134   :  { %153 = shalt.err (!%p150_p12)
}
 0x135   :  { %s154_s4 = scalar_lea.hbm %s226_s3, 128 }
 0x136   :  { %p155_p13 = scmp.ne.s32.totalorder %s226_s3, %s154_s4  ;;  %p158_p0 = scmp.lt.u32.totalorder %s154_s4, %s226_s3 }
 0x138   :  { %p160_p1 = pnand %p158_p0, %p155_p13 }
 0x13a   :  { %163 = shalt.err (!%p160_p1)
}
 0x13b   :  { %103 = dma.vmem_to_hbm [thread:$0]  %s101_s26, 128, %s226_s3, [#allocation4]  }
 0x13c   :  { %166 = dma.done.wait [#allocation4], 128  }
 0x13d   :  { %167 = vsyncadd [#allocation4], 4294967168 }
 0x13e   :  { %107 = vsyncpa [#allocation3], 1 }
 0x13f   :  { %108 = vsyncpa [#allocation4], 1 }

</bundles_post_ra>
